<compile_context>
chip_gen: v6e
topology: v6e:2x2x1
jax: 0.10.0
libtpu: 0.0.40
codegen_flags: <defaults>
</compile_context>

<pallas_src>
import jax
import jax.numpy as jnp
from jax import lax
from jax.experimental import pallas as pl
from jax.experimental.pallas import tpu as pltpu

LAYER_1_SIZE = 256
LAYER_2_SIZE = 128
LAYER_3_SIZE = 64
BN_EPS = 1e-5
LANE = 128  # batch tiles are multiples of 128 so the (1, tile) output row is lane-dense


def _round_up(n, m):
    return ((n + m - 1) // m) * m


def _num_tensorcores():
    """2 on v7x (2 TCs/chip), 1 on v5e/v6e. Only used for the tile-split heuristic."""
    try:
        kind = jax.devices()[0].device_kind.lower()
    except Exception:
        return 1
    return 2 if ("v7" in kind or "7x" in kind) else 1


def _default_batch_tile(B):
    ncores = _num_tensorcores()
    # Single-TC chips: fewer, bigger grid steps. v7x: guarantee >=2 steps so the
    # "parallel" batch axis actually splits across both TensorCores.
    cap = 1024 if ncores >= 2 else 2048
    tile = _round_up(max(B, 1), LANE)
    if ncores >= 2:
        tile = min(tile, max(LANE, _round_up(pl.cdiv(B, ncores), LANE)))
    return max(LANE, min(cap, tile))


def _fraud_kernel(x_ref,
                  w1_ref, b1_ref,
                  w2_ref, b2_ref,
                  w3_ref, b3_ref,
                  w4_ref, b4_ref,
                  o_ref):
    cdt = w1_ref.dtype                 # MXU input dtype (bf16 by default)
    x = x_ref[...].astype(cdt)         # cast inside the kernel: x read from HBM once

    # Layer 1: Linear (BN folded into W/b) -> ReLU   (Dropout = identity in eval)
    h = jnp.dot(x, w1_ref[...], preferred_element_type=jnp.float32)
    h = jnp.maximum(h + b1_ref[...], 0.0).astype(cdt)

    # Layer 2
    h = jnp.dot(h, w2_ref[...], preferred_element_type=jnp.float32)
    h = jnp.maximum(h + b2_ref[...], 0.0).astype(cdt)

    # Layer 3
    h = jnp.dot(h, w3_ref[...], preferred_element_type=jnp.float32)
    h = jnp.maximum(h + b3_ref[...], 0.0).astype(cdt)

    # Output head: (1, 64) @ (tile, 64)^T -> (1, tile). Batch lands in lanes, so the
    # output block is lane-dense (unmasked stores) and writeback is 4 B per batch row.
    out_row = lax.dot_general(w4_ref[...], h,
                              dimension_numbers=(((1,), (1,)), ((), ())),
                              preferred_element_type=jnp.float32)
    o_ref[...] = (out_row + b4_ref[...]).astype(o_ref.dtype)


def _fold_params(params, compute_dtype):
    """Fold BN running stats into the Linear layers; return MXU-ready weights."""
    (w1, b1, g1, be1, m1, v1,
     w2, b2, g2, be2, m2, v2,
     w3, b3, g3, be3, m3, v3,
     w4, b4) = params

    def fold(w, b, gamma, beta, mean, var):
        scale = gamma / jnp.sqrt(var + BN_EPS)                        # (1, N)
        wf = (w * scale).astype(compute_dtype)                        # column scale
        bf = (b * scale + (beta - mean * scale)).astype(jnp.float32)  # fp32 epilogue
        return wf, bf

    w1f, b1f = fold(w1, b1, g1, be1, m1, v1)
    w2f, b2f = fold(w2, b2, g2, be2, m2, v2)
    w3f, b3f = fold(w3, b3, g3, be3, m3, v3)

    w4r = jnp.reshape(w4, (1, -1)).astype(compute_dtype)   # (1, 64) head row
    b4r = jnp.reshape(b4, (1, 1)).astype(jnp.float32)      # (1, 1) head bias
    return w1f, b1f, w2f, b2f, w3f, b3f, w4r, b4r


def fraud_forward(x, params, *, batch_tile=None, compute_dtype=jnp.bfloat16):
    """Fused forward pass of the Fraud MLP (eval mode) as a single Pallas kernel."""
    B, F = x.shape
    if batch_tile is None:
        batch_tile = _default_batch_tile(B)
    batch_tile = max(LANE, _round_up(batch_tile, LANE))

    B_pad = _round_up(B, batch_tile)
    num_tiles = B_pad // batch_tile

    w1f, b1f, w2f, b2f, w3f, b3f, w4r, b4r = _fold_params(params, compute_dtype)

    x_in = x
    if B_pad != B:
        # Only the ragged batch tail is padded; the dtype cast happens inside the kernel.
        x_in = jnp.pad(x_in, ((0, B_pad - B), (0, 0)))

    def wspec(arr):
        # Whole-array block, identical for every grid step (stays resident in VMEM).
        return pl.BlockSpec(arr.shape, lambda i: (0, 0))

    in_specs = [
        # If profiling on v7x shows exposed x-input DMA, add
        # pipeline_mode=pl.Buffered(3) to this BlockSpec.
        pl.BlockSpec((batch_tile, F), lambda i: (i, 0)),  # batch tile of x
        wspec(w1f), wspec(b1f),
        wspec(w2f), wspec(b2f),
        wspec(w3f), wspec(b3f),
        wspec(w4r), wspec(b4r),
    ]
    # Lane-dense output: one (1, batch_tile) row per grid step.
    out_specs = pl.BlockSpec((1, batch_tile), lambda i: (0, i))

    out = pl.pallas_call(
        _fraud_kernel,
        out_shape=jax.ShapeDtypeStruct((1, B_pad), jnp.float32),
        grid_spec=pltpu.PrefetchScalarGridSpec(
            num_scalar_prefetch=0,
            grid=(num_tiles,),
            in_specs=in_specs,
            out_specs=out_specs,
        ),
        compiler_params=pltpu.CompilerParams(
            dimension_semantics=("parallel",),
        ),
    )(x_in, w1f, b1f, w2f, b2f, w3f, b3f, w4r, b4r)

    return out[0, :B].reshape(B, 1)


def init_params(key, in_features):
    """Deterministic params mirroring the PyTorch module (raw, un-folded form).

    Linear layers: U(-1/sqrt(fan_in), 1/sqrt(fan_in)) like torch.nn.Linear.
    BatchNorm1d params/running stats are randomized (not the trivial defaults) so the
    BN-folding path is actually exercised. All per-feature vectors are (1, N) rows.
    """
    dims = [in_features, LAYER_1_SIZE, LAYER_2_SIZE, LAYER_3_SIZE, 1]
    keys = jax.random.split(key, 20)
    ki = iter(range(20))

    params = []
    for li in range(4):
        fan_in, fan_out = dims[li], dims[li + 1]
        bound = 1.0 / jnp.sqrt(jnp.float32(fan_in))
        w = jax.random.uniform(keys[next(ki)], (fan_in, fan_out),
                               minval=-bound, maxval=bound, dtype=jnp.float32)
        b = jax.random.uniform(keys[next(ki)], (1, fan_out),
                               minval=-bound, maxval=bound, dtype=jnp.float32)
        params.append(w)
        params.append(b)
        if li < 3:  # BatchNorm1d after the first three Linear layers
            gamma = 1.0 + 0.1 * jax.random.normal(keys[next(ki)], (1, fan_out), dtype=jnp.float32)
            beta = 0.1 * jax.random.normal(keys[next(ki)], (1, fan_out), dtype=jnp.float32)
            run_mean = 0.05 * jax.random.normal(keys[next(ki)], (1, fan_out), dtype=jnp.float32)
            run_var = jnp.abs(1.0 + 0.1 * jax.random.normal(
                keys[next(ki)], (1, fan_out), dtype=jnp.float32))
            params.extend([gamma, beta, run_mean, run_var])
    return tuple(params)


def reference_forward(x, params):
    """Pure-JAX eval-mode reference (explicit BN with running stats, dropout=identity)."""
    (w1, b1, g1, be1, m1, v1,
     w2, b2, g2, be2, m2, v2,
     w3, b3, g3, be3, m3, v3,
     w4, b4) = params

    def block(h, w, b, g, be, m, v):
        h = h @ w + b
        h = (h - m) / jnp.sqrt(v + BN_EPS) * g + be
        return jnp.maximum(h, 0.0)

    h = block(x, w1, b1, g1, be1, m1, v1)
    h = block(h, w2, b2, g2, be2, m2, v2)
    h = block(h, w3, b3, g3, be3, m3, v3)
    return h @ w4 + b4


if __name__ == "__main__":
    key = jax.random.PRNGKey(0)
    k_param, k_x, k_x2 = jax.random.split(key, 3)

    batch, in_features = 50, 32  # non-multiple-of-128 batch exercises the padding path
    params = init_params(k_param, in_features)
    x = jax.random.normal(k_x, (batch, in_features), dtype=jnp.float32)
    ref = reference_forward(x, params)

    # fp32 path: strict check.
    out_f32 = jax.block_until_ready(fraud_forward(x, params, compute_dtype=jnp.float32))
    assert out_f32.shape == (batch, 1)
    assert jnp.allclose(out_f32, ref, atol=1e-4, rtol=1e-4), "fp32 mismatch vs reference"

    # bf16-matmul path (default on all chips now): looser tolerance.
    out_bf16 = jax.block_until_ready(fraud_forward(x, params))
    assert out_bf16.shape == (batch, 1)
    assert jnp.allclose(out_bf16, ref, atol=1e-1, rtol=1e-1), "bf16 mismatch vs reference"

    # Multi-tile path (2 grid steps + ragged tail), fp32 strict.
    batch2 = 200
    x2 = jax.random.normal(k_x2, (batch2, in_features), dtype=jnp.float32)
    ref2 = reference_forward(x2, params)
    out2 = jax.block_until_ready(
        fraud_forward(x2, params, batch_tile=128, compute_dtype=jnp.float32))
    assert out2.shape == (batch2, 1)
    assert jnp.allclose(out2, ref2, atol=1e-4, rtol=1e-4), "multi-tile mismatch vs reference"

    print("KERNEL_OK")
</pallas_src>

<mosaic_0001>
module attributes {stable_mosaic.version = 11 : i64} {
  func.func @_fraud_kernel(%arg0: i32, %arg1: memref<128x32xf32, #tpu.memory_space<vmem>>, %arg2: memref<32x256xf32, #tpu.memory_space<vmem>>, %arg3: memref<1x256xf32, #tpu.memory_space<vmem>>, %arg4: memref<256x128xf32, #tpu.memory_space<vmem>>, %arg5: memref<1x128xf32, #tpu.memory_space<vmem>>, %arg6: memref<128x64xf32, #tpu.memory_space<vmem>>, %arg7: memref<1x64xf32, #tpu.memory_space<vmem>>, %arg8: memref<1x64xf32, #tpu.memory_space<vmem>>, %arg9: memref<1x1xf32, #tpu.memory_space<vmem>>, %arg10: memref<1x128xf32, #tpu.memory_space<vmem>>) attributes {dimension_semantics = [#tpu.dimension_semantics<parallel>], iteration_bounds = array<i64: 1>, scalar_prefetch = 0 : i64, scratch_operands = 0 : i64, tpu.core_type = #tpu.core_type<tc>, window_params = [{transform_indices = @transform_0, window_bounds = array<i64: 128, 32>}, {pipeline_mode = #tpu.pipeline_mode<synchronous>, transform_indices = @transform_1, window_bounds = array<i64: 32, 256>}, {pipeline_mode = #tpu.pipeline_mode<synchronous>, transform_indices = @transform_2, window_bounds = array<i64: 1, 256>}, {pipeline_mode = #tpu.pipeline_mode<synchronous>, transform_indices = @transform_3, window_bounds = array<i64: 256, 128>}, {pipeline_mode = #tpu.pipeline_mode<synchronous>, transform_indices = @transform_4, window_bounds = array<i64: 1, 128>}, {pipeline_mode = #tpu.pipeline_mode<synchronous>, transform_indices = @transform_5, window_bounds = array<i64: 128, 64>}, {pipeline_mode = #tpu.pipeline_mode<synchronous>, transform_indices = @transform_6, window_bounds = array<i64: 1, 64>}, {pipeline_mode = #tpu.pipeline_mode<synchronous>, transform_indices = @transform_7, window_bounds = array<i64: 1, 64>}, {pipeline_mode = #tpu.pipeline_mode<synchronous>, transform_indices = @transform_8, window_bounds = array<i64: 1, 1>}, {transform_indices = @transform_9, window_bounds = array<i64: 1, 128>}]} {
    %c0 = arith.constant 0 : index
    %c0_0 = arith.constant 0 : index
    %0 = vector.load %arg1[%c0, %c0_0] : memref<128x32xf32, #tpu.memory_space<vmem>>, vector<128x32xf32>
    %c0_1 = arith.constant 0 : index
    %c0_2 = arith.constant 0 : index
    %1 = vector.load %arg2[%c0_1, %c0_2] : memref<32x256xf32, #tpu.memory_space<vmem>>, vector<32x256xf32>
    %cst = arith.constant dense<0.000000e+00> : vector<128x256xf32>
    %2 = tpu.matmul %0, %1, %cst {dimension_numbers = #tpu.dot_dimension_numbers<[1], [0], [0], [1], [0, 0, 1, 1], [], []>} : vector<128x32xf32>, vector<32x256xf32>, vector<128x256xf32> -> vector<128x256xf32>
    %c0_3 = arith.constant 0 : index
    %c0_4 = arith.constant 0 : index
    %3 = vector.load %arg3[%c0_3, %c0_4] : memref<1x256xf32, #tpu.memory_space<vmem>>, vector<1x256xf32>
    %4 = vector.broadcast %3 : vector<1x256xf32> to vector<128x256xf32>
    %5 = arith.addf %2, %4 : vector<128x256xf32>
    %cst_5 = arith.constant 0.000000e+00 : f32
    %6 = vector.broadcast %cst_5 : f32 to vector<128x256xf32>
    %7 = arith.maximumf %5, %6 : vector<128x256xf32>
    %c0_6 = arith.constant 0 : index
    %c0_7 = arith.constant 0 : index
    %8 = vector.load %arg4[%c0_6, %c0_7] : memref<256x128xf32, #tpu.memory_space<vmem>>, vector<256x128xf32>
    %cst_8 = arith.constant dense<0.000000e+00> : vector<128x128xf32>
    %9 = tpu.matmul %7, %8, %cst_8 {dimension_numbers = #tpu.dot_dimension_numbers<[1], [0], [0], [1], [0, 0, 1, 1], [], []>} : vector<128x256xf32>, vector<256x128xf32>, vector<128x128xf32> -> vector<128x128xf32>
    %c0_9 = arith.constant 0 : index
    %c0_10 = arith.constant 0 : index
    %10 = vector.load %arg5[%c0_9, %c0_10] : memref<1x128xf32, #tpu.memory_space<vmem>>, vector<1x128xf32>
    %11 = vector.broadcast %10 : vector<1x128xf32> to vector<128x128xf32>
    %12 = arith.addf %9, %11 : vector<128x128xf32>
    %cst_11 = arith.constant 0.000000e+00 : f32
    %13 = vector.broadcast %cst_11 : f32 to vector<128x128xf32>
    %14 = arith.maximumf %12, %13 : vector<128x128xf32>
    %c0_12 = arith.constant 0 : index
    %c0_13 = arith.constant 0 : index
    %15 = vector.load %arg6[%c0_12, %c0_13] : memref<128x64xf32, #tpu.memory_space<vmem>>, vector<128x64xf32>
    %cst_14 = arith.constant dense<0.000000e+00> : vector<128x64xf32>
    %16 = tpu.matmul %14, %15, %cst_14 {dimension_numbers = #tpu.dot_dimension_numbers<[1], [0], [0], [1], [0, 0, 1, 1], [], []>} : vector<128x128xf32>, vector<128x64xf32>, vector<128x64xf32> -> vector<128x64xf32>
    %c0_15 = arith.constant 0 : index
    %c0_16 = arith.constant 0 : index
    %17 = vector.load %arg7[%c0_15, %c0_16] : memref<1x64xf32, #tpu.memory_space<vmem>>, vector<1x64xf32>
    %18 = vector.broadcast %17 : vector<1x64xf32> to vector<128x64xf32>
    %19 = arith.addf %16, %18 : vector<128x64xf32>
    %cst_17 = arith.constant 0.000000e+00 : f32
    %20 = vector.broadcast %cst_17 : f32 to vector<128x64xf32>
    %21 = arith.maximumf %19, %20 : vector<128x64xf32>
    %c0_18 = arith.constant 0 : index
    %c0_19 = arith.constant 0 : index
    %22 = vector.load %arg8[%c0_18, %c0_19] : memref<1x64xf32, #tpu.memory_space<vmem>>, vector<1x64xf32>
    %cst_20 = arith.constant dense<0.000000e+00> : vector<1x128xf32>
    %23 = tpu.matmul %22, %21, %cst_20 {dimension_numbers = #tpu.dot_dimension_numbers<[1], [1], [0], [0], [0, 0, 1, 0], [], []>} : vector<1x64xf32>, vector<128x64xf32>, vector<1x128xf32> -> vector<1x128xf32>
    %c0_21 = arith.constant 0 : index
    %c0_22 = arith.constant 0 : index
    %24 = vector.load %arg9[%c0_21, %c0_22] : memref<1x1xf32, #tpu.memory_space<vmem>>, vector<1x1xf32>
    %25 = vector.broadcast %24 : vector<1x1xf32> to vector<1x128xf32>
    %26 = arith.addf %23, %25 : vector<1x128xf32>
    %c0_23 = arith.constant 0 : index
    %c0_24 = arith.constant 0 : index
    %27 = vector.load %arg10[%c0_23, %c0_24] : memref<1x128xf32, #tpu.memory_space<vmem>>, vector<1x128xf32>
    tpu.vector_store %arg10[%c0_23, %c0_24], %26 {strides = array<i32>} : memref<1x128xf32, #tpu.memory_space<vmem>>, vector<1x128xf32>,
    return
  }
  func.func @transform_0(%arg0: i32) -> (i32, i32) {
    %c0_i32 = arith.constant 0 : i32
    %c0_i32_0 = arith.constant 0 : i32
    return %arg0, %c0_i32 : i32, i32
  }
  func.func @transform_1(%arg0: i32) -> (i32, i32) {
    %c0_i32 = arith.constant 0 : i32
    %c0_i32_0 = arith.constant 0 : i32
    %c0_i32_1 = arith.constant 0 : i32
    return %c0_i32, %c0_i32_0 : i32, i32
  }
  func.func @transform_2(%arg0: i32) -> (i32, i32) {
    %c0_i32 = arith.constant 0 : i32
    %c0_i32_0 = arith.constant 0 : i32
    %c0_i32_1 = arith.constant 0 : i32
    return %c0_i32, %c0_i32_0 : i32, i32
  }
  func.func @transform_3(%arg0: i32) -> (i32, i32) {
    %c0_i32 = arith.constant 0 : i32
    %c0_i32_0 = arith.constant 0 : i32
    %c0_i32_1 = arith.constant 0 : i32
    return %c0_i32, %c0_i32_0 : i32, i32
  }
  func.func @transform_4(%arg0: i32) -> (i32, i32) {
    %c0_i32 = arith.constant 0 : i32
    %c0_i32_0 = arith.constant 0 : i32
    %c0_i32_1 = arith.constant 0 : i32
    return %c0_i32, %c0_i32_0 : i32, i32
  }
  func.func @transform_5(%arg0: i32) -> (i32, i32) {
    %c0_i32 = arith.constant 0 : i32
    %c0_i32_0 = arith.constant 0 : i32
    %c0_i32_1 = arith.constant 0 : i32
    return %c0_i32, %c0_i32_0 : i32, i32
  }
  func.func @transform_6(%arg0: i32) -> (i32, i32) {
    %c0_i32 = arith.constant 0 : i32
    %c0_i32_0 = arith.constant 0 : i32
    %c0_i32_1 = arith.constant 0 : i32
    return %c0_i32, %c0_i32_0 : i32, i32
  }
  func.func @transform_7(%arg0: i32) -> (i32, i32) {
    %c0_i32 = arith.constant 0 : i32
    %c0_i32_0 = arith.constant 0 : i32
    %c0_i32_1 = arith.constant 0 : i32
    return %c0_i32, %c0_i32_0 : i32, i32
  }
  func.func @transform_8(%arg0: i32) -> (i32, i32) {
    %c0_i32 = arith.constant 0 : i32
    %c0_i32_0 = arith.constant 0 : i32
    %c0_i32_1 = arith.constant 0 : i32
    return %c0_i32, %c0_i32_0 : i32, i32
  }
  func.func @transform_9(%arg0: i32) -> (i32, i32) {
    %c0_i32 = arith.constant 0 : i32
    %c0_i32_0 = arith.constant 0 : i32
    return %c0_i32, %arg0 : i32, i32
  }
}

</mosaic_0001>

<bundles_post_ra>
// kernel: tpu_custom_call.1
= control target key start
LH: loop header
LB: loop body
LE: loop exit
PB: predicated region body
PF: predicated region fallthrough
CT: control target
= control target key end

     0   :  { %s1574_s0 = inlined_call_operand.vmem [shape: f32[128,32], index: 0, kind: input, shape index: {}]   ;;  %s1575_s1 = inlined_call_operand.hbm [shape: f32[32,256], index: 1, kind: input, shape index: {}]   ;;  %s1576_s2 = inlined_call_operand.vmem [shape: f32[1,256], index: 2, kind: input, shape index: {}]   ;;  %s1577_s3 = inlined_call_operand.vmem [shape: f32[256,128], index: 3, kind: input, shape index: {}]   ;;  %s1578_s4 = inlined_call_operand.vmem [shape: f32[1,128], index: 4, kind: input, shape index: {}]   ;;  %s1579_s5 = inlined_call_operand.vmem [shape: f32[128,64], index: 5, kind: input, shape index: {}]   ;;  %s1580_s6 = inlined_call_operand.vmem [shape: f32[1,64], index: 6, kind: input, shape index: {}]   ;;  %s1581_s7 = inlined_call_operand.vmem [shape: f32[1,64], index: 7, kind: input, shape index: {}]   ;;  %s1582_s8 = inlined_call_operand.<no memory space> [shape: f32[1,1], index: 8, kind: input, shape index: {}]   ;;  %s1583_s9 = inlined_call_operand.hbm [shape: f32[1,128], index: 9, kind: output, shape index: {}]  }
   0x1   :  { %v14_v0 = vstv %s1582_s8 }
   0x2   :  { %15 = vst [vmem:[#allocation2] sm:$0x1] %v14_v0 }
   0x3   :  { %16 = vsyncpa [#allocation4], 0 }
   0x4   :  { %17 = vsyncpa [#allocation5], 0  ;;  %s1167_s11 = smov [#allocation3]  }
   0x5   :  { %s25_s12 = sshll.u32 %s1167_s11, 4  ;;  %s26_s12 = int_to_ptr.vmem [resolvable:$true] %s25_s12 }
   0x6   :  { %s1131_s13 = scalar_lea.vmem %s26_s12, 1024  ;;  %p1136_p1 = scmp.lt.s32.totalorder %s26_s12, %s26_s12 }
   0x7   :  { %p1132_p0 = scmp.ne.s32.totalorder %s26_s12, %s1131_s13  ;;  %p1137_p2 = scmp.lt.s32.totalorder %s1131_s13, %s1131_s13 }
   0x9   :  { %p1138_p3 = por %p1137_p2, %p1136_p1 }
   0xb   :  { %p1139_p4 = pnand %p1138_p3, %p1132_p0 }
   0xd   :  { %1142 = shalt.err (!%p1139_p4)
}
   0xe   :  { %s1168_s14 = smov 256   ;;  %s1169_s15 = smov 16  }
   0xf   :  { %31 = dma.hbm_to_vmem [thread:$0]  %s1575_s1, 1024, %s26_s12, [#allocation4], %s1168_s14, %s1168_s14, %s1169_s15  }
  0x10   :  { %1163 = dma.done.wait [#allocation4], 1024  }
  0x11   :  { %1164 = vsyncadd [#allocation4], 4294966272  ;;  %v1170_v1 = vmov 0.0   ;;  %v72_v2 = vld [vmem:[#allocation3 + $0x38] sm:$0xff]  ;;  %v71_v3 = vld [vmem:[#allocation3 + $0x30] sm:$0xff]  ;;  %vm85_vm0 = vcmask 261120  }
  0x12   :  { %198 = vmatprep.mubr.f32.mxu0 %v1170_v1  ;;  %v70_v4 = vld [vmem:[#allocation3 + $0x28] sm:$0xff]  ;;  %158 = vmatprep.subr.mxu0 %v72_v2  ;;  %v69_v5 = vld [vmem:[#allocation3 + $0x20] sm:$0xff]  ;;  %v68_v6 = vld [vmem:[#allocation3 + $0x18] sm:$0xff]  ;;  %vm1171_vm1 = vmmov 0   ;;  %vm722_vm2 = vcmask 523264   ;;  %s1173_s29 = smov [#allocation6]  }
  0x13   :  { %159 = vmatpush1.msra.mxu0 %v71_v3  ;;  %v67_v7 = vld [vmem:[#allocation3 + $0x10] sm:$0xff]  ;;  %v66_v8 = vld [vmem:[#allocation3 + $0x8] sm:$0xff]  ;;  %v65_v9 = vld [vmem:[#allocation3] sm:$0xff]  ;;  %s851_s30 = sshll.u32 %s1173_s29, 4  ;;  %s852_s30 = int_to_ptr.vmem [resolvable:$true] %s851_s30 }
  0x14   :  { %160 = vmatprep.subr.mxu0 %v70_v4  ;;  %v49_v10 = vld [vmem:[%s1574_s0] sm:$0xff]  ;;  %v358_v11 = vld [vmem:[%s1577_s3 + $0xf8] sm:$0xff]  ;;  %v357_v13 = vld [vmem:[%s1577_s3 + $0xf0] sm:$0xff]  ;;  %s1143_s10 = scalar_lea.vmem %s852_s30, 16  ;;  %s1147_s11 = scalar_lea.vmem %s852_s30, 32 }
  0x15   :  { %161 = vmatpush1.msra.mxu0 %v69_v5  ;;  %v342_v12 = vld [vmem:[%s1577_s3 + $0x78] sm:$0xff]  ;;  %895 = vmatprep.subr.mxu1 %v358_v11  ;;  %v341_v14 = vld [vmem:[%s1577_s3 + $0x70] sm:$0xff]  ;;  %v50_v15 = vld [vmem:[%s1574_s0 + $0x8] sm:$0xff]  ;;  %v75_v5 = vlaneseq  ;;  %p1144_p5 = scmp.ne.s32.totalorder %s852_s30, %s1143_s10  ;;  %p1148_p6 = scmp.lt.s32.totalorder %s852_s30, %s852_s30 }
  0x16   :  { %162 = vmatprep.subr.mxu0 %v68_v6  ;;  %896 = vmatpush3.msra.mxu1 %v342_v12  ;;  %v356_v16 = vld [vmem:[%s1577_s3 + $0xe8] sm:$0xff]  ;;  %v355_v18 = vld [vmem:[%s1577_s3 + $0xe0] sm:$0xff]  ;;  %v51_v20 = vld [vmem:[%s1574_s0 + $0x10] sm:$0xff]  ;;  %p1149_p7 = scmp.lt.s32.totalorder %s1147_s11, %s1143_s10 }
  0x17   :  { %163 = vmatpush1.msra.mxu0 %v67_v7  ;;  %897 = vmatprep.subr.mxu1 %v357_v13  ;;  %v340_v17 = vld [vmem:[%s1577_s3 + $0x68] sm:$0xff]  ;;  %v339_v19 = vld [vmem:[%s1577_s3 + $0x60] sm:$0xff]  ;;  %v354_v21 = vld [vmem:[%s1577_s3 + $0xd8] sm:$0xff]  ;;  %v1437_v6 = vshrl.u32 %v75_v5, 7 }
  0x18   :  { %164 = vmatprep.subr.mxu0 %v66_v8  ;;  %898 = vmatpush3.msra.mxu1 %v341_v14  ;;  %v338_v22 = vld [vmem:[%s1577_s3 + $0x58] sm:$0xff]  ;;  %v353_v23 = vld [vmem:[%s1577_s3 + $0xd0] sm:$0xff]  ;;  %v352_v26 = vld [vmem:[%s1577_s3 + $0xc8] sm:$0xff]  ;;  %p1150_p8 = por %p1149_p7, %p1148_p6 }
  0x19   :  { %165 = vmatpush1.msra.mxu0 %v65_v9  ;;  %899 = vmatprep.subr.mxu1 %v356_v16  ;;  %v337_v24 = vld [vmem:[%s1577_s3 + $0x50] sm:$0xff]  ;;  %v52_v25 = vld [vmem:[%s1574_s0 + $0x18] sm:$0xff]  ;;  %v336_v27 = vld [vmem:[%s1577_s3 + $0x48] sm:$0xff]  ;;  %v77_v7 = vsub.s32 0, %v1437_v6  ;;  %v81_v9 = vsub.s32 1, %v1437_v6 }
  0x1a   :  { %860 = vmatmul.mubr.msk.f32.vlgmr.msra.gmra.mxu0 %vm85_vm0, %v49_v10  ;;  %900 = vmatpush3.msra.mxu1 %v340_v17  ;;  %v351_v28 = vld [vmem:[%s1577_s3 + $0xc0] sm:$0xff]  ;;  %v350_v31 = vld [vmem:[%s1577_s3 + $0xb8] sm:$0xff]  ;;  %v349_v33 = vld [vmem:[%s1577_s3 + $0xb0] sm:$0xff]  ;;  %p1151_p9 = pnand %p1150_p8, %p1144_p5 }
  0x1b   :  { %204 = vmatprep.mubr.f32.mxu0 %v1170_v1  ;;  %901 = vmatprep.subr.mxu1 %v355_v18  ;;  %v335_v29 = vld [vmem:[%s1577_s3 + $0x40] sm:$0xff]  ;;  %v334_v32 = vld [vmem:[%s1577_s3 + $0x38] sm:$0xff]  ;;  %v333_v34 = vld [vmem:[%s1577_s3 + $0x30] sm:$0xff] }
  0x1c   :  { %902 = vmatpush3.msra.mxu1 %v339_v19  ;;  %v53_v30 = vld [vmem:[%s1574_s0 + $0x20] sm:$0xff]  ;;  %v54_v35 = vld [vmem:[%s1574_s0 + $0x28] sm:$0xff]  ;;  %v55_v40 = vld [vmem:[%s1574_s0 + $0x30] sm:$0xff] }
  0x1d   :  { %903 = vmatprep.subr.mxu1 %v354_v21  ;;  %v348_v36 = vld [vmem:[%s1577_s3 + $0xa8] sm:$0xff]  ;;  %v347_v38 = vld [vmem:[%s1577_s3 + $0xa0] sm:$0xff]  ;;  %v56_v41 = vld [vmem:[%s1574_s0 + $0x38] sm:$0xff] }
  0x1e   :  { %861 = vmatmul.mubr.msk.f32.gmra.mxu0 %vm85_vm0, %v50_v15  ;;  %904 = vmatpush3.msra.mxu1 %v338_v22  ;;  %v332_v37 = vld [vmem:[%s1577_s3 + $0x28] sm:$0xff]  ;;  %v331_v39 = vld [vmem:[%s1577_s3 + $0x20] sm:$0xff]  ;;  %v59_v44 = vld [vmem:[%s1574_s0 + $0x50] sm:$0xff] }
  0x1f   :  { %210 = vmatprep.mubr.f32.mxu0 %v1170_v1  ;;  %905 = vmatprep.subr.mxu1 %v353_v23  ;;  %v57_v42 = vld [vmem:[%s1574_s0 + $0x40] sm:$0xff]  ;;  %v58_v43 = vld [vmem:[%s1574_s0 + $0x48] sm:$0xff]  ;;  %v60_v45 = vld [vmem:[%s1574_s0 + $0x58] sm:$0xff] }
  0x20   :  { %906 = vmatpush3.msra.mxu1 %v337_v24  ;;  %v61_v46 = vld [vmem:[%s1574_s0 + $0x60] sm:$0xff]  ;;  %v62_v47 = vld [vmem:[%s1574_s0 + $0x68] sm:$0xff]  ;;  %v63_v48 = vld [vmem:[%s1574_s0 + $0x70] sm:$0xff] }
  0x21   :  { %907 = vmatprep.subr.mxu1 %v352_v26  ;;  %v64_v49 = vld [vmem:[%s1574_s0 + $0x78] sm:$0xff]  ;;  %v345_v52 = vld [vmem:[%s1577_s3 + $0x90] sm:$0xff]  ;;  %v344_v54 = vld [vmem:[%s1577_s3 + $0x88] sm:$0xff] }
  0x22   :  { %862 = vmatmul.mubr.msk.f32.gmra.mxu0 %vm85_vm0, %v51_v20  ;;  %908 = vmatpush3.msra.mxu1 %v336_v27  ;;  %v346_v50 = vld [vmem:[%s1577_s3 + $0x98] sm:$0xff]  ;;  %v329_v53 = vld [vmem:[%s1577_s3 + $0x10] sm:$0xff]  ;;  %v328_v55 = vld [vmem:[%s1577_s3 + $0x8] sm:$0xff] }
  0x23   :  { %216 = vmatprep.mubr.f32.mxu0 %v1170_v1  ;;  %909 = vmatprep.subr.mxu1 %v351_v28  ;;  %v330_v51 = vld [vmem:[%s1577_s3 + $0x18] sm:$0xff]  ;;  %v343_v56 = vld [vmem:[%s1577_s3 + $0x80] sm:$0xff]  ;;  %v541_v59 = vld [vmem:[%s1579_s5 + $0x70] sm:$0xff] }
  0x24   :  { %910 = vmatpush3.msra.mxu1 %v335_v29  ;;  %v327_v57 = vld [vmem:[%s1577_s3] sm:$0xff]  ;;  %v542_v58 = vld [vmem:[%s1579_s5 + $0x78] sm:$0xff]  ;;  %v540_v60 = vld [vmem:[%s1579_s5 + $0x68] sm:$0xff] }
  0x25   :  { %911 = vmatprep.subr.mxu1 %v350_v31  ;;  %1024 = vmatprep.subr.mxu0 %v542_v58  ;;  %v539_v61 = vld [vmem:[%s1579_s5 + $0x60] sm:$0xff]  ;;  %v538_v62 = vld [vmem:[%s1579_s5 + $0x58] sm:$0xff]  ;;  %v537_v63 = vld [vmem:[%s1579_s5 + $0x50] sm:$0xff] }
  0x26   :  { %863 = vmatmul.mubr.msk.f32.gmra.mxu0 %vm85_vm0, %v52_v25  ;;  %912 = vmatpush3.msra.mxu1 %v334_v32  ;;  %v536_v0 = vld [vmem:[%s1579_s5 + $0x48] sm:$0xff]  ;;  %v535_v2 = vld [vmem:[%s1579_s5 + $0x40] sm:$0xff]  ;;  %v534_v3 = vld [vmem:[%s1579_s5 + $0x38] sm:$0xff] }
  0x27   :  { %222 = vmatprep.mubr.f32.mxu0 %v1170_v1  ;;  %913 = vmatprep.subr.mxu1 %v349_v33  ;;  %v533_v4 = vld [vmem:[%s1579_s5 + $0x30] sm:$0xff]  ;;  %v73_v8 = vld [vmem:[%s1576_s2] sm:$0x3] }
  0x28   :  { %914 = vmatpush3.msra.mxu1 %v333_v34  ;;  %1025 = vmatpush3.msra.mxu0 %v542_v58  ;;  %v1446_v10 = vrot.slane %v73_v8, %v77_v7  ;;  %v1448_v11 = vrot.slane %v73_v8, %v81_v9 }
  0x29   :  { %915 = vmatprep.subr.mxu1 %v348_v36  ;;  %1026 = vmatprep.subr.mxu0 %v541_v59 }
  0x2a   :  { %864 = vmatmul.mubr.msk.f32.gmra.mxu0 %vm85_vm0, %v53_v30  ;;  %916 = vmatpush3.msra.mxu1 %v332_v37 }
  0x2b   :  { %228 = vmatprep.mubr.f32.mxu0 %v1170_v1  ;;  %917 = vmatprep.subr.mxu1 %v347_v38 }
  0x2c   :  { %918 = vmatpush3.msra.mxu1 %v331_v39  ;;  %1027 = vmatpush3.msra.mxu0 %v541_v59 }
  0x2d   :  { %919 = vmatprep.subr.mxu1 %v346_v50  ;;  %1028 = vmatprep.subr.mxu0 %v540_v60 }
  0x2e   :  { %865 = vmatmul.mubr.msk.f32.gmra.mxu0 %vm85_vm0, %v54_v35  ;;  %920 = vmatpush3.msra.mxu1 %v330_v51 }
  0x2f   :  { %234 = vmatprep.mubr.f32.mxu0 %v1170_v1  ;;  %921 = vmatprep.subr.mxu1 %v345_v52 }
  0x30   :  { %922 = vmatpush3.msra.mxu1 %v329_v53  ;;  %1029 = vmatpush3.msra.mxu0 %v540_v60 }
  0x31   :  { %923 = vmatprep.subr.mxu1 %v344_v54  ;;  %1030 = vmatprep.subr.mxu0 %v539_v61 }
  0x32   :  { %866 = vmatmul.mubr.msk.f32.gmra.mxu0 %vm85_vm0, %v55_v40  ;;  %924 = vmatpush3.msra.mxu1 %v328_v55 }
  0x33   :  { %240 = vmatprep.mubr.f32.mxu0 %v1170_v1  ;;  %925 = vmatprep.subr.mxu1 %v343_v56 }
  0x34   :  { %926 = vmatpush3.msra.mxu1 %v327_v57  ;;  %1031 = vmatpush3.msra.mxu0 %v539_v61 }
  0x35   :  { %1080 = vmatprep.subr.mxu1 %v1170_v1  ;;  %1032 = vmatprep.subr.mxu0 %v538_v62 }
  0x36   :  { %867 = vmatmul.mubr.msk.f32.gmra.mxu0 %vm85_vm0, %v56_v41 }
  0x37   :  { %246 = vmatprep.mubr.f32.mxu0 %v1170_v1  ;;  %1033 = vmatpush3.msra.mxu0 %v538_v62 }
  0x38   :  { %1034 = vmatprep.subr.mxu0 %v537_v63 }
  0x39   :  { %1035 = vmatpush3.msra.mxu0 %v537_v63 }
  0x3a   :  { %868 = vmatmul.mubr.msk.f32.gmra.mxu0 %vm85_vm0, %v57_v42  ;;  %1036 = vmatprep.subr.mxu0 %v536_v0 }
  0x3b   :  { %252 = vmatprep.mubr.f32.mxu0 %v1170_v1  ;;  %1037 = vmatpush3.msra.mxu0 %v536_v0 }
  0x3c   :  { %1038 = vmatprep.subr.mxu0 %v535_v2 }
  0x3d   :  { %1039 = vmatpush3.msra.mxu0 %v535_v2 }
  0x3e   :  { %869 = vmatmul.mubr.msk.f32.gmra.mxu0 %vm85_vm0, %v58_v43  ;;  %1040 = vmatprep.subr.mxu0 %v534_v3 }
  0x3f   :  { %258 = vmatprep.mubr.f32.mxu0 %v1170_v1  ;;  %1041 = vmatpush3.msra.mxu0 %v534_v3 }
  0x40   :  { %1042 = vmatprep.subr.mxu0 %v533_v4 }
  0x41   :  { %1043 = vmatpush3.msra.mxu0 %v533_v4 }
  0x42   :  { %870 = vmatmul.mubr.msk.f32.gmra.mxu0 %vm85_vm0, %v59_v44 }
  0x43   :  { %264 = vmatprep.mubr.f32.mxu0 %v1170_v1 }
  0x46   :  { %871 = vmatmul.mubr.msk.f32.gmra.mxu0 %vm85_vm0, %v60_v45 }
  0x47   :  { %270 = vmatprep.mubr.f32.mxu0 %v1170_v1 }
  0x4a   :  { %872 = vmatmul.mubr.msk.f32.gmra.mxu0 %vm85_vm0, %v61_v46 }
  0x4b   :  { %276 = vmatprep.mubr.f32.mxu0 %v1170_v1 }
  0x4e   :  { %873 = vmatmul.mubr.msk.f32.gmra.mxu0 %vm85_vm0, %v62_v47 }
  0x4f   :  { %282 = vmatprep.mubr.f32.mxu0 %v1170_v1 }
  0x52   :  { %874 = vmatmul.mubr.msk.f32.gmra.mxu0 %vm85_vm0, %v63_v48 }
  0x53   :  { %288 = vmatprep.mubr.f32.mxu0 %v1170_v1 }
  0x56   :  { %875 = vmatmul.mubr.msk.f32.gmra.mxu0 %vm85_vm0, %v64_v49 }
  0xda   :  { %v200_v12 = vpop.f32.mrf.mxu0 }
  0xdb   :  { %v201_v13 = vadd.f32 %v200_v12, %v1446_v10 }
  0xdc   :  { %v202_v14 = vpop.f32.mrf.mxu0 }
  0xdd   :  { %v203_v15 = vadd.f32 %v202_v14, %v1448_v11  ;;  %v295_v18 = vmax.f32 %v201_v13, 0.0 }
  0xde   :  { %v206_v16 = vpop.f32.mrf.mxu0 }
  0xdf   :  { %v296_v17 = vmax.f32 %v203_v15, 0.0  ;;  %v207_v19 = vadd.f32 %v206_v16, %v1446_v10 }
  0xe0   :  { %v208_v20 = vpop.f32.mrf.mxu0 }
  0xe1   :  { %v209_v21 = vadd.f32 %v208_v20, %v1448_v11  ;;  %430 = vmatprep.mubr.f32.mxu1 %v296_v17  ;;  %v297_v24 = vmax.f32 %v207_v19, 0.0 }
  0xe2   :  { %v212_v22 = vpop.f32.mrf.mxu0  ;;  %431 = vmatmul.mubr.f32.vlgmr.msra.gmra.mxu1 %v295_v18 }
  0xe3   :  { %v298_v23 = vmax.f32 %v209_v21, 0.0  ;;  %v213_v25 = vadd.f32 %v212_v22, %v1446_v10 }
  0xe4   :  { %v214_v26 = vpop.f32.mrf.mxu0 }
  0xe5   :  { %v215_v27 = vadd.f32 %v214_v26, %v1448_v11  ;;  %435 = vmatprep.mubr.f32.mxu1 %v298_v23  ;;  %v299_v30 = vmax.f32 %v213_v25, 0.0 }
  0xe6   :  { %v218_v28 = vpop.f32.mrf.mxu0  ;;  %436 = vmatmul.mubr.f32.gmra.mxu1 %v297_v24 }
  0xe7   :  { %v300_v29 = vmax.f32 %v215_v27, 0.0  ;;  %v219_v31 = vadd.f32 %v218_v28, %v1446_v10 }
  0xe8   :  { %v220_v32 = vpop.f32.mrf.mxu0 }
  0xe9   :  { %v221_v33 = vadd.f32 %v220_v32, %v1448_v11  ;;  %440 = vmatprep.mubr.f32.mxu1 %v300_v29  ;;  %v301_v36 = vmax.f32 %v219_v31, 0.0 }
  0xea   :  { %v224_v34 = vpop.f32.mrf.mxu0  ;;  %441 = vmatmul.mubr.f32.gmra.mxu1 %v299_v30 }
  0xeb   :  { %v302_v35 = vmax.f32 %v221_v33, 0.0  ;;  %v225_v37 = vadd.f32 %v224_v34, %v1446_v10 }
  0xec   :  { %v226_v38 = vpop.f32.mrf.mxu0 }
  0xed   :  { %v227_v39 = vadd.f32 %v226_v38, %v1448_v11  ;;  %445 = vmatprep.mubr.f32.mxu1 %v302_v35  ;;  %v303_v42 = vmax.f32 %v225_v37, 0.0 }
  0xee   :  { %v230_v40 = vpop.f32.mrf.mxu0  ;;  %446 = vmatmul.mubr.f32.gmra.mxu1 %v301_v36 }
  0xef   :  { %v304_v41 = vmax.f32 %v227_v39, 0.0  ;;  %v231_v43 = vadd.f32 %v230_v40, %v1446_v10 }
  0xf0   :  { %v232_v44 = vpop.f32.mrf.mxu0 }
  0xf1   :  { %v233_v45 = vadd.f32 %v232_v44, %v1448_v11  ;;  %450 = vmatprep.mubr.f32.mxu1 %v304_v41  ;;  %v305_v48 = vmax.f32 %v231_v43, 0.0 }
  0xf2   :  { %v236_v46 = vpop.f32.mrf.mxu0  ;;  %451 = vmatmul.mubr.f32.gmra.mxu1 %v303_v42 }
  0xf3   :  { %v306_v47 = vmax.f32 %v233_v45, 0.0  ;;  %v237_v49 = vadd.f32 %v236_v46, %v1446_v10 }
  0xf4   :  { %v238_v50 = vpop.f32.mrf.mxu0 }
  0xf5   :  { %v239_v51 = vadd.f32 %v238_v50, %v1448_v11  ;;  %455 = vmatprep.mubr.f32.mxu1 %v306_v47  ;;  %v307_v54 = vmax.f32 %v237_v49, 0.0  ;;  %v532_v49 = vld [vmem:[%s1579_s5 + $0x28] sm:$0xff]  ;;  %v531_v50 = vld [vmem:[%s1579_s5 + $0x20] sm:$0xff] }
  0xf6   :  { %v242_v52 = vpop.f32.mrf.mxu0  ;;  %456 = vmatmul.mubr.f32.gmra.mxu1 %v305_v48  ;;  %1044 = vmatprep.subr.mxu0 %v532_v49 }
  0xf7   :  { %v308_v53 = vmax.f32 %v239_v51, 0.0  ;;  %v243_v55 = vadd.f32 %v242_v52, %v1446_v10  ;;  %1045 = vmatpush3.msra.mxu0 %v532_v49  ;;  %v528_v51 = vld [vmem:[%s1579_s5 + $0x8] sm:$0xff]  ;;  %v527_v52 = vld [vmem:[%s1579_s5] sm:$0xff] }
  0xf8   :  { %v244_v56 = vpop.f32.mrf.mxu0  ;;  %1046 = vmatprep.subr.mxu0 %v531_v50 }
  0xf9   :  { %v245_v57 = vadd.f32 %v244_v56, %v1448_v11  ;;  %460 = vmatprep.mubr.f32.mxu1 %v308_v53  ;;  %v309_v60 = vmax.f32 %v243_v55, 0.0  ;;  %1047 = vmatpush3.msra.mxu0 %v531_v50 }
  0xfa   :  { %v248_v58 = vpop.f32.mrf.mxu0  ;;  %461 = vmatmul.mubr.f32.gmra.mxu1 %v307_v54  ;;  %v1503_v54 = vld [vmem:[%s1578_s4] ss:$0 sm:$0xff] }
  0xfb   :  { %v310_v59 = vmax.f32 %v245_v57, 0.0  ;;  %v249_v61 = vadd.f32 %v248_v58, %v1446_v10 }
  0xfc   :  { %v250_v62 = vpop.f32.mrf.mxu0 }
  0xfd   :  { %v251_v63 = vadd.f32 %v250_v62, %v1448_v11  ;;  %465 = vmatprep.mubr.f32.mxu1 %v310_v59  ;;  %v311_v3 = vmax.f32 %v249_v61, 0.0 }
  0xfe   :  { %v254_v0 = vpop.f32.mrf.mxu0  ;;  %466 = vmatmul.mubr.f32.gmra.mxu1 %v309_v60 }
  0xff   :  { %v312_v2 = vmax.f32 %v251_v63, 0.0  ;;  %v255_v4 = vadd.f32 %v254_v0, %v1446_v10 }
 0x100   :  { %v256_v5 = vpop.f32.mrf.mxu0 }
 0x101   :  { %v257_v8 = vadd.f32 %v256_v5, %v1448_v11  ;;  %470 = vmatprep.mubr.f32.mxu1 %v312_v2  ;;  %v313_v13 = vmax.f32 %v255_v4, 0.0 }
 0x102   :  { %v260_v9 = vpop.f32.mrf.mxu0  ;;  %471 = vmatmul.mubr.f32.gmra.mxu1 %v311_v3 }
 0x103   :  { %v314_v12 = vmax.f32 %v257_v8, 0.0  ;;  %v261_v14 = vadd.f32 %v260_v9, %v1446_v10 }
 0x104   :  { %v262_v15 = vpop.f32.mrf.mxu0 }
 0x105   :  { %v263_v16 = vadd.f32 %v262_v15, %v1448_v11  ;;  %475 = vmatprep.mubr.f32.mxu1 %v314_v12  ;;  %v315_v19 = vmax.f32 %v261_v14, 0.0 }
 0x106   :  { %v266_v17 = vpop.f32.mrf.mxu0  ;;  %476 = vmatmul.mubr.f32.gmra.mxu1 %v313_v13 }
 0x107   :  { %v316_v18 = vmax.f32 %v263_v16, 0.0  ;;  %v267_v20 = vadd.f32 %v266_v17, %v1446_v10 }
 0x108   :  { %v268_v21 = vpop.f32.mrf.mxu0 }
 0x109   :  { %v269_v22 = vadd.f32 %v268_v21, %v1448_v11  ;;  %480 = vmatprep.mubr.f32.mxu1 %v316_v18  ;;  %v317_v25 = vmax.f32 %v267_v20, 0.0 }
 0x10a   :  { %v272_v23 = vpop.f32.mrf.mxu0  ;;  %481 = vmatmul.mubr.f32.gmra.mxu1 %v315_v19 }
 0x10b   :  { %v318_v24 = vmax.f32 %v269_v22, 0.0  ;;  %v273_v26 = vadd.f32 %v272_v23, %v1446_v10 }
 0x10c   :  { %v274_v27 = vpop.f32.mrf.mxu0 }
 0x10d   :  { %v275_v28 = vadd.f32 %v274_v27, %v1448_v11  ;;  %485 = vmatprep.mubr.f32.mxu1 %v318_v24  ;;  %v319_v31 = vmax.f32 %v273_v26, 0.0 }
 0x10e   :  { %v278_v29 = vpop.f32.mrf.mxu0  ;;  %486 = vmatmul.mubr.f32.gmra.mxu1 %v317_v25 }
 0x10f   :  { %v320_v30 = vmax.f32 %v275_v28, 0.0  ;;  %v279_v32 = vadd.f32 %v278_v29, %v1446_v10 }
 0x110   :  { %v280_v33 = vpop.f32.mrf.mxu0 }
 0x111   :  { %v281_v34 = vadd.f32 %v280_v33, %v1448_v11  ;;  %490 = vmatprep.mubr.f32.mxu1 %v320_v30  ;;  %v321_v37 = vmax.f32 %v279_v32, 0.0 }
 0x112   :  { %v284_v35 = vpop.f32.mrf.mxu0  ;;  %491 = vmatmul.mubr.f32.gmra.mxu1 %v319_v31 }
 0x113   :  { %v322_v36 = vmax.f32 %v281_v34, 0.0  ;;  %v285_v38 = vadd.f32 %v284_v35, %v1446_v10 }
 0x114   :  { %v286_v39 = vpop.f32.mrf.mxu0 }
 0x115   :  { %v287_v40 = vadd.f32 %v286_v39, %v1448_v11  ;;  %495 = vmatprep.mubr.f32.mxu1 %v322_v36  ;;  %v323_v43 = vmax.f32 %v285_v38, 0.0 }
 0x116   :  { %v290_v41 = vpop.f32.mrf.mxu0  ;;  %496 = vmatmul.mubr.f32.gmra.mxu1 %v321_v37 }
 0x117   :  { %v324_v42 = vmax.f32 %v287_v40, 0.0  ;;  %v291_v44 = vadd.f32 %v290_v41, %v1446_v10  ;;  %v530_v10 = vld [vmem:[%s1579_s5 + $0x18] sm:$0xff] }
 0x118   :  { %v292_v45 = vpop.f32.mrf.mxu0  ;;  %1048 = vmatprep.subr.mxu0 %v530_v10 }
 0x119   :  { %v293_v46 = vadd.f32 %v292_v45, %v1448_v11  ;;  %500 = vmatprep.mubr.f32.mxu1 %v324_v42  ;;  %v325_v48 = vmax.f32 %v291_v44, 0.0  ;;  %1049 = vmatpush3.msra.mxu0 %v530_v10  ;;  %v529_v11 = vld [vmem:[%s1579_s5 + $0x10] sm:$0xff] }
 0x11a   :  { %501 = vmatmul.mubr.f32.gmra.mxu1 %v323_v43  ;;  %1050 = vmatprep.subr.mxu0 %v529_v11 }
 0x11b   :  { %v326_v47 = vmax.f32 %v293_v46, 0.0  ;;  %1051 = vmatpush3.msra.mxu0 %v529_v11 }
 0x11c   :  { %1052 = vmatprep.subr.mxu0 %v528_v51 }
 0x11d   :  { %505 = vmatprep.mubr.f32.mxu1 %v326_v47  ;;  %1053 = vmatpush3.msra.mxu0 %v528_v51 }
 0x11e   :  { %506 = vmatmul.mubr.f32.gmra.mxu1 %v325_v48  ;;  %1054 = vmatprep.subr.mxu0 %v527_v52 }
 0x11f   :  { %1055 = vmatpush3.msra.mxu0 %v527_v52  ;;  %1112 = vmatprep.mubr.msk.f32.mxu1 %vm1171_vm1, %v1170_v1 }
 0x1a2   :  { %v927_v53 = vpop.f32.mrf.mxu1 }
 0x1a4   :  { %v928_v55 = vpop.f32.mrf.mxu1 }
 0x1a5   :  { %v929_v56 = vadd.f32 %v928_v55, %v927_v53 }
 0x1a6   :  { %v930_v57 = vpop.f32.mrf.mxu1 }
 0x1a7   :  { %v433_v58 = vadd.f32 %v929_v56, %v1503_v54 }
 0x1a8   :  { %v931_v59 = vpop.f32.mrf.mxu1 }
 0x1a9   :  { %v511_v60 = vmax.f32 %v433_v58, 0.0  ;;  %v932_v61 = vadd.f32 %v931_v59, %v930_v57 }
 0x1aa   :  { %v933_v62 = vpop.f32.mrf.mxu1 }
 0x1ab   :  { %v438_v63 = vadd.f32 %v932_v61, %v1503_v54  ;;  %1056 = vmatprep.mubr.f32.mxu0 %v511_v60 }
 0x1ac   :  { %v934_v0 = vpop.f32.mrf.mxu1 }
 0x1ad   :  { %v512_v2 = vmax.f32 %v438_v63, 0.0  ;;  %v935_v3 = vadd.f32 %v934_v0, %v933_v62 }
 0x1ae   :  { %v936_v4 = vpop.f32.mrf.mxu1 }
 0x1af   :  { %v443_v5 = vadd.f32 %v935_v3, %v1503_v54  ;;  %1057 = vmatmul.mubr.f32.vlgmr.msra.gmra.mxu0 %v512_v2 }
 0x1b0   :  { %v937_v8 = vpop.f32.mrf.mxu1 }
 0x1b1   :  { %v513_v9 = vmax.f32 %v443_v5, 0.0  ;;  %v938_v12 = vadd.f32 %v937_v8, %v936_v4 }
 0x1b2   :  { %v939_v13 = vpop.f32.mrf.mxu1 }
 0x1b3   :  { %v448_v14 = vadd.f32 %v938_v12, %v1503_v54  ;;  %1059 = vmatprep.mubr.f32.mxu0 %v513_v9 }
 0x1b4   :  { %v940_v15 = vpop.f32.mrf.mxu1 }
 0x1b5   :  { %v514_v16 = vmax.f32 %v448_v14, 0.0  ;;  %v941_v17 = vadd.f32 %v940_v15, %v939_v13  ;;  %v712_v15 = vld [vmem:[#allocation2] sm:$0x1] }
 0x1b6   :  { %v942_v18 = vpop.f32.mrf.mxu1 }
 0x1b7   :  { %v453_v19 = vadd.f32 %v941_v17, %v1503_v54  ;;  %1060 = vmatmul.mubr.f32.gmra.mxu0 %v514_v16  ;;  %v1172_v16 = vmov 0  }
 0x1b8   :  { %v943_v20 = vpop.f32.mrf.mxu1  ;;  %1122 = vset.pattern.permute.xlu0 %v1172_v16 }
 0x1b9   :  { %v515_v21 = vmax.f32 %v453_v19, 0.0  ;;  %v944_v22 = vadd.f32 %v943_v20, %v942_v18  ;;  %715 = vperm.xlu0 %1122, %v712_v15  }
 0x1ba   :  { %v945_v23 = vpop.f32.mrf.mxu1 }
 0x1bb   :  { %v458_v24 = vadd.f32 %v944_v22, %v1503_v54  ;;  %1062 = vmatprep.mubr.f32.mxu0 %v515_v21 }
 0x1bc   :  { %v946_v25 = vpop.f32.mrf.mxu1 }
 0x1bd   :  { %v516_v26 = vmax.f32 %v458_v24, 0.0  ;;  %v947_v27 = vadd.f32 %v946_v25, %v945_v23 }
 0x1be   :  { %v948_v28 = vpop.f32.mrf.mxu1 }
 0x1bf   :  { %v463_v29 = vadd.f32 %v947_v27, %v1503_v54  ;;  %1063 = vmatmul.mubr.f32.gmra.mxu0 %v516_v26 }
 0x1c0   :  { %v949_v30 = vpop.f32.mrf.mxu1 }
 0x1c1   :  { %v517_v31 = vmax.f32 %v463_v29, 0.0  ;;  %v950_v32 = vadd.f32 %v949_v30, %v948_v28  ;;  %v877_v30 = vld [vmem:[%s1580_s6] ss:$0 sm:$0xff] }
 0x1c2   :  { %v951_v33 = vpop.f32.mrf.mxu1 }
 0x1c3   :  { %v468_v34 = vadd.f32 %v950_v32, %v1503_v54  ;;  %1065 = vmatprep.mubr.f32.mxu0 %v517_v31 }
 0x1c4   :  { %v952_v35 = vpop.f32.mrf.mxu1 }
 0x1c5   :  { %v518_v36 = vmax.f32 %v468_v34, 0.0  ;;  %v953_v37 = vadd.f32 %v952_v35, %v951_v33 }
 0x1c6   :  { %v954_v38 = vpop.f32.mrf.mxu1 }
 0x1c7   :  { %v473_v39 = vadd.f32 %v953_v37, %v1503_v54  ;;  %1066 = vmatmul.mubr.f32.gmra.mxu0 %v518_v36 }
 0x1c8   :  { %v955_v40 = vpop.f32.mrf.mxu1 }
 0x1c9   :  { %v519_v41 = vmax.f32 %v473_v39, 0.0  ;;  %v956_v42 = vadd.f32 %v955_v40, %v954_v38 }
 0x1ca   :  { %v957_v43 = vpop.f32.mrf.mxu1 }
 0x1cb   :  { %v478_v44 = vadd.f32 %v956_v42, %v1503_v54  ;;  %1068 = vmatprep.mubr.f32.mxu0 %v519_v41 }
 0x1cc   :  { %v958_v45 = vpop.f32.mrf.mxu1 }
 0x1cd   :  { %v520_v46 = vmax.f32 %v478_v44, 0.0  ;;  %v959_v47 = vadd.f32 %v958_v45, %v957_v43 }
 0x1ce   :  { %v960_v48 = vpop.f32.mrf.mxu1 }
 0x1cf   :  { %v483_v49 = vadd.f32 %v959_v47, %v1503_v54  ;;  %1069 = vmatmul.mubr.f32.gmra.mxu0 %v520_v46 }
 0x1d0   :  { %v961_v50 = vpop.f32.mrf.mxu1 }
 0x1d1   :  { %v521_v10 = vmax.f32 %v483_v49, 0.0  ;;  %v962_v11 = vadd.f32 %v961_v50, %v960_v48 }
 0x1d2   :  { %v963_v51 = vpop.f32.mrf.mxu1 }
 0x1d3   :  { %v488_v52 = vadd.f32 %v962_v11, %v1503_v54  ;;  %1071 = vmatprep.mubr.f32.mxu0 %v521_v10 }
 0x1d4   :  { %v964_v53 = vpop.f32.mrf.mxu1 }
 0x1d5   :  { %v522_v55 = vmax.f32 %v488_v52, 0.0  ;;  %v965_v56 = vadd.f32 %v964_v53, %v963_v51 }
 0x1d6   :  { %v966_v57 = vpop.f32.mrf.mxu1 }
 0x1d7   :  { %v493_v58 = vadd.f32 %v965_v56, %v1503_v54  ;;  %1072 = vmatmul.mubr.f32.gmra.mxu0 %v522_v55 }
 0x1d8   :  { %v967_v59 = vpop.f32.mrf.mxu1 }
 0x1d9   :  { %v523_v60 = vmax.f32 %v493_v58, 0.0  ;;  %v968_v61 = vadd.f32 %v967_v59, %v966_v57 }
 0x1da   :  { %v969_v62 = vpop.f32.mrf.mxu1 }
 0x1db   :  { %v498_v63 = vadd.f32 %v968_v61, %v1503_v54  ;;  %1074 = vmatprep.mubr.f32.mxu0 %v523_v60 }
 0x1dc   :  { %v970_v0 = vpop.f32.mrf.mxu1 }
 0x1dd   :  { %v524_v2 = vmax.f32 %v498_v63, 0.0  ;;  %v971_v3 = vadd.f32 %v970_v0, %v969_v62  ;;  %v711_v0 = vld [vmem:[%s1581_s7] sm:$0x1] }
 0x1de   :  { %v972_v4 = vpop.f32.mrf.mxu1 }
 0x1df   :  { %v503_v5 = vadd.f32 %v971_v3, %v1503_v54  ;;  %1075 = vmatmul.mubr.f32.gmra.mxu0 %v524_v2 }
 0x1e0   :  { %v973_v8 = vpop.f32.mrf.mxu1 }
 0x1e1   :  { %v525_v9 = vmax.f32 %v503_v5, 0.0  ;;  %v974_v12 = vadd.f32 %v973_v8, %v972_v4 }
 0x1e3   :  { %v508_v13 = vadd.f32 %v974_v12, %v1503_v54  ;;  %1077 = vmatprep.mubr.f32.mxu0 %v525_v9 }
 0x1e5   :  { %v526_v14 = vmax.f32 %v508_v13, 0.0 }
 0x1e7   :  { %1078 = vmatmul.mubr.f32.gmra.mxu0 %v526_v14 }
 0x234   :  { %v716_v2 = vpop.permute.xlu0 %715 }
 0x235   :  { %v721_v3 = vrot.slane %v716_v2, %v77_v7 }
 0x26f   :  { %v1522_v17 = vpop.f32.mrf.mxu0 }
 0x270   :  { %v622_v59 = vadd.f32 %v1522_v17, %v877_v30 }
 0x271   :  { %v1524_v18 = vpop.f32.mrf.mxu0 }
 0x272   :  { %v696_v61 = vmax.f32 %v622_v59, 0.0  ;;  %v617_v62 = vadd.f32 %v877_v30, %v1524_v18 }
 0x274   :  { %v695_v63 = vmax.f32 %v617_v62, 0.0 }
 0x277   :  { %v1061_v19 = vpop.f32.mrf.mxu0 }
 0x278   :  { %v632_v55 = vadd.f32 %v1061_v19, %v877_v30 }
 0x279   :  { %v1526_v20 = vpop.f32.mrf.mxu0 }
 0x27a   :  { %v698_v57 = vmax.f32 %v632_v55, 0.0  ;;  %v627_v58 = vadd.f32 %v877_v30, %v1526_v20 }
 0x27c   :  { %v697_v60 = vmax.f32 %v627_v58, 0.0 }
 0x27f   :  { %v1064_v21 = vpop.f32.mrf.mxu0 }
 0x280   :  { %v642_v11 = vadd.f32 %v1064_v21, %v877_v30 }
 0x281   :  { %v636_v22 = vpop.f32.mrf.mxu0 }
 0x282   :  { %v700_v52 = vmax.f32 %v642_v11, 0.0  ;;  %v637_v53 = vadd.f32 %v877_v30, %v636_v22 }
 0x284   :  { %v699_v56 = vmax.f32 %v637_v53, 0.0 }
 0x287   :  { %v1067_v54 = vpop.f32.mrf.mxu0 }
 0x288   :  { %v652_v48 = vadd.f32 %v1067_v54, %v877_v30 }
 0x289   :  { %v646_v23 = vpop.f32.mrf.mxu0 }
 0x28a   :  { %v702_v50 = vmax.f32 %v652_v48, 0.0  ;;  %v647_v10 = vadd.f32 %v877_v30, %v646_v23 }
 0x28c   :  { %v701_v51 = vmax.f32 %v647_v10, 0.0 }
 0x28f   :  { %v1070_v24 = vpop.f32.mrf.mxu0 }
 0x290   :  { %v662_v44 = vadd.f32 %v1070_v24, %v877_v30 }
 0x291   :  { %v656_v25 = vpop.f32.mrf.mxu0 }
 0x292   :  { %v704_v46 = vmax.f32 %v662_v44, 0.0  ;;  %v657_v47 = vadd.f32 %v877_v30, %v656_v25 }
 0x294   :  { %v703_v49 = vmax.f32 %v657_v47, 0.0 }
 0x297   :  { %v1073_v26 = vpop.f32.mrf.mxu0 }
 0x298   :  { %v672_v40 = vadd.f32 %v1073_v26, %v877_v30 }
 0x299   :  { %v666_v27 = vpop.f32.mrf.mxu0 }
 0x29a   :  { %v706_v42 = vmax.f32 %v672_v40, 0.0  ;;  %v667_v43 = vadd.f32 %v877_v30, %v666_v27 }
 0x29c   :  { %v705_v45 = vmax.f32 %v667_v43, 0.0 }
 0x29f   :  { %v1076_v28 = vpop.f32.mrf.mxu0 }
 0x2a0   :  { %v682_v36 = vadd.f32 %v1076_v28, %v877_v30 }
 0x2a1   :  { %v676_v29 = vpop.f32.mrf.mxu0 }
 0x2a2   :  { %v708_v38 = vmax.f32 %v682_v36, 0.0  ;;  %v677_v39 = vadd.f32 %v877_v30, %v676_v29 }
 0x2a4   :  { %v707_v41 = vmax.f32 %v677_v39, 0.0 }
 0x2a7   :  { %v1079_v31 = vpop.f32.mrf.mxu0 }
 0x2a8   :  { %v692_v32 = vadd.f32 %v1079_v31, %v877_v30 }
 0x2a9   :  { %v686_v33 = vpop.f32.mrf.mxu0 }
 0x2aa   :  { %v710_v34 = vmax.f32 %v692_v32, 0.0  ;;  %v687_v35 = vadd.f32 %v877_v30, %v686_v33 }
 0x2ac   :  { %1081 = vmatpush3.xpose.msk.msra.mxu1 %vm722_vm2, %v710_v34  ;;  %v709_v37 = vmax.f32 %v687_v35, 0.0 }
 0x2ad   :  { %1082 = vmatprep.subr.mxu1 %v1170_v1 }
 0x2b0   :  { %1083 = vmatpush3.xpose.msk.msra.mxu1 %vm722_vm2, %v709_v37 }
 0x2b1   :  { %1084 = vmatprep.subr.mxu1 %v1170_v1 }
 0x2b4   :  { %1085 = vmatpush3.xpose.msk.msra.mxu1 %vm722_vm2, %v708_v38 }
 0x2b5   :  { %1086 = vmatprep.subr.mxu1 %v1170_v1 }
 0x2b8   :  { %1087 = vmatpush3.xpose.msk.msra.mxu1 %vm722_vm2, %v707_v41 }
 0x2b9   :  { %1088 = vmatprep.subr.mxu1 %v1170_v1 }
 0x2bc   :  { %1089 = vmatpush3.xpose.msk.msra.mxu1 %vm722_vm2, %v706_v42 }
 0x2bd   :  { %1090 = vmatprep.subr.mxu1 %v1170_v1 }
 0x2c0   :  { %1091 = vmatpush3.xpose.msk.msra.mxu1 %vm722_vm2, %v705_v45 }
 0x2c1   :  { %1092 = vmatprep.subr.mxu1 %v1170_v1 }
 0x2c4   :  { %1093 = vmatpush3.xpose.msk.msra.mxu1 %vm722_vm2, %v704_v46 }
 0x2c5   :  { %1094 = vmatprep.subr.mxu1 %v1170_v1 }
 0x2c8   :  { %1095 = vmatpush3.xpose.msk.msra.mxu1 %vm722_vm2, %v703_v49 }
 0x2c9   :  { %1096 = vmatprep.subr.mxu1 %v1170_v1 }
 0x2cc   :  { %1097 = vmatpush3.xpose.msk.msra.mxu1 %vm722_vm2, %v702_v50 }
 0x2cd   :  { %1098 = vmatprep.subr.mxu1 %v1170_v1 }
 0x2d0   :  { %1099 = vmatpush3.xpose.msk.msra.mxu1 %vm722_vm2, %v701_v51 }
 0x2d1   :  { %1100 = vmatprep.subr.mxu1 %v1170_v1 }
 0x2d4   :  { %1101 = vmatpush3.xpose.msk.msra.mxu1 %vm722_vm2, %v700_v52 }
 0x2d5   :  { %1102 = vmatprep.subr.mxu1 %v1170_v1 }
 0x2d8   :  { %1103 = vmatpush3.xpose.msk.msra.mxu1 %vm722_vm2, %v699_v56 }
 0x2d9   :  { %1104 = vmatprep.subr.mxu1 %v1170_v1 }
 0x2dc   :  { %1105 = vmatpush3.xpose.msk.msra.mxu1 %vm722_vm2, %v698_v57 }
 0x2dd   :  { %1106 = vmatprep.subr.mxu1 %v1170_v1 }
 0x2e0   :  { %1107 = vmatpush3.xpose.msk.msra.mxu1 %vm722_vm2, %v697_v60 }
 0x2e1   :  { %1108 = vmatprep.subr.mxu1 %v1170_v1 }
 0x2e4   :  { %1109 = vmatpush3.xpose.msk.msra.mxu1 %vm722_vm2, %v696_v61 }
 0x2e5   :  { %1110 = vmatprep.subr.mxu1 %v1170_v1 }
 0x2e8   :  { %1111 = vmatpush3.xpose.msk.msra.mxu1 %vm722_vm2, %v695_v63 }
 0x2eb   :  { %1113 = vmatmul.mubr.msk.f32.vlgmr.msra.gmra.mxu1 %vm722_vm2, %v711_v0 }
 0x3ab   :  { %v840_v4 = vpop.f32.mrf.mxu1 }
 0x3ac   :  { %v841_v5 = vadd.f32 %v840_v4, %v721_v3 }
 0x3ad   :  { %v1114_v8 = vpop.f32.mrf.mxu1 }
 0x3ae   :  { %844 = vst [vmem:[#allocation6] sm:$0x1] %v841_v5 }
 0x3af   :  { %1154 = shalt.err (!%p1151_p9)
}
 0x3b0   :  { %854 = dma.vmem_to_hbm [thread:$0]  %s852_s30, 16, %s1583_s9, [#allocation5]  }
 0x3b1   :  { %1165 = dma.done.wait [#allocation5], 16  }
 0x3b2   :  { %1166 = vsyncadd [#allocation5], 4294967280 }
 0x3b3   :  { %858 = vsyncpa [#allocation4], 1 }
 0x3b4   :  { %859 = vsyncpa [#allocation5], 1 }

</bundles_post_ra>
